<compile_context>
chip_gen: v7x
topology: tpu7x:2x2x1
jax: 0.10.0
libtpu: 0.0.40
codegen_flags: <defaults>
</compile_context>

<pallas_src>
import jax
import jax.numpy as jnp
from jax.experimental import pallas as pl
from jax.experimental.pallas import tpu as pltpu


def sdee_kernel(x_ref, adj_ref, w1_ref, b1_ref, w2_ref, b2_ref, o_ref):
    # x_ref : (Bt, T, N, F) f32          adj_ref: (N, N) bf16
    # w1_ref: (F, H) bf16 (pre-scaled by 1/T)   b1_ref: (1, Bt*H) f32
    # w2_ref: (H, C) bf16                        b2_ref: (1, Bt*C) f32
    # o_ref : (1, N, Bt*C) f32
    bt, _, n, _ = x_ref.shape
    h_dim = w1_ref.shape[1]

    # --- time mean (1/T folded into W1): leading-axis reduce -> plain VPU adds ---
    xs = jnp.sum(x_ref[...], axis=1)                       # (Bt, N, F) f32
    xs = xs.reshape(bt * n, xs.shape[-1])                  # (Bt*N, F)

    # --- GC1 dense: (Bt*N, F) @ (F, H) on the MXU, f32 accumulation ---
    s1 = jnp.dot(xs.astype(jnp.bfloat16), w1_ref[...],
                 preferred_element_type=jnp.float32)       # (Bt*N, H)

    # Fuse the batch into the lane dim so graph propagation is ONE lane-dense
    # matmul: (N, N) @ (N, Bt*H) instead of Bt narrow (N, H) matmuls.
    s1_fused = jnp.concatenate(
        [s1[b * n:(b + 1) * n, :] for b in range(bt)], axis=1)      # (N, Bt*H)
    h = jnp.dot(adj_ref[...], s1_fused.astype(jnp.bfloat16),
                preferred_element_type=jnp.float32)        # (N, Bt*H)
    h = jnp.maximum(h + b1_ref[...], 0.0)                  # bias + ReLU in f32

    # F.dropout with training=False is the identity (eval-mode forward).
    # TODO(synk): training-mode dropout (pltpu.prng_random_bits mask) not implemented.

    # --- GC2 dense: un-fuse back to (Bt*N, H) rows for the weight matmul ---
    h_rows = jnp.concatenate(
        [h[:, b * h_dim:(b + 1) * h_dim] for b in range(bt)], axis=0)  # (Bt*N, H)
    s2 = jnp.dot(h_rows.astype(jnp.bfloat16), w2_ref[...],
                 preferred_element_type=jnp.float32)       # (Bt*N, C)

    # --- GC2 graph propagation, again lane-fused: (N, N) @ (N, Bt*C) ---
    s2_fused = jnp.concatenate(
        [s2[b * n:(b + 1) * n, :] for b in range(bt)], axis=1)      # (N, Bt*C)
    out = jnp.dot(adj_ref[...], s2_fused.astype(jnp.bfloat16),
                  preferred_element_type=jnp.float32)      # (N, Bt*C)
    out = out + b2_ref[...]

    o_ref[0] = out.astype(o_ref.dtype)                     # lane-dense store


def _pick_batch_tile(batch, nhid):
    """Largest divisor of `batch` that leaves >= 2 parallel grid steps when
    possible (v7x: 2 TensorCores) while keeping the fused lane width modest."""
    lane_cap = max(1, 512 // max(nhid, 1))
    best = 1
    for d in range(1, batch + 1):
        if batch % d != 0 or d > lane_cap:
            continue
        if batch > 1 and batch // d < 2:
            continue
        best = d
    return best


def sdee_forward(x, adj, w1, b1, w2, b2, *, batch_tile=None):
    B, N, T, F = x.shape
    H = w1.shape[1]
    C = w2.shape[1]

    Bt = batch_tile if batch_tile is not None else _pick_batch_tile(B, H)
    assert B % Bt == 0, (B, Bt)
    G = B // Bt

    # Layout plumbing: time axis leading so the in-kernel mean is a VPU add.
    # TODO(synk): in production, produce x directly in (B, T, N, F) layout to
    # avoid this extra HBM pass over x.
    x_t = jnp.transpose(x, (0, 2, 1, 3))                   # (B, T, N, F)

    # bf16 MXU operands (f32 accumulation inside the kernel).  The 1/T mean
    # scale is folded into W1 exactly once, here (not again in the kernel).
    adj_bf = adj.astype(jnp.bfloat16)
    w1_bf = (w1.astype(jnp.float32) / float(T)).astype(jnp.bfloat16)
    w2_bf = w2.astype(jnp.bfloat16)

    # Biases pre-tiled to the fused (batch-in-lanes) layout, kept in f32.
    b1_t = jnp.tile(b1.reshape(1, H).astype(jnp.float32), (1, Bt))   # (1, Bt*H)
    b2_t = jnp.tile(b2.reshape(1, C).astype(jnp.float32), (1, Bt))   # (1, Bt*C)

    # Rough VMEM budget (double-buffered x/out blocks + grid-invariant operands);
    # explicit limit keeps the pipeline double-buffered on v7x's 64 MiB VMEM.
    block_bytes = (
        2 * Bt * T * N * F * 4            # x block (f32), double buffered
        + 2 * N * Bt * C * 4              # out block (f32), double buffered
        + 2 * (N * N + F * H + H * C) * 2  # adj/w1/w2 (bf16)
        + 2 * Bt * (H + C) * 4)            # tiled biases (f32)
    vmem_limit = int(min(max(4 * block_bytes, 8 * 1024 * 1024), 96 * 1024 * 1024))

    out_slab = pl.pallas_call(
        sdee_kernel,
        out_shape=jax.ShapeDtypeStruct((G, N, Bt * C), jnp.float32),
        grid_spec=pltpu.PrefetchScalarGridSpec(
            num_scalar_prefetch=0,
            grid=(G,),
            in_specs=[
                pl.BlockSpec((Bt, T, N, F), lambda g: (g, 0, 0, 0)),
                # Grid-invariant operands (constant index_map).
                # TODO(synk): single-buffer these (pipeline_mode=pl.Buffered(1))
                # once that knob is exercised; at these sizes it is negligible.
                pl.BlockSpec((N, N), lambda g: (0, 0)),
                pl.BlockSpec((F, H), lambda g: (0, 0)),
                pl.BlockSpec((1, Bt * H), lambda g: (0, 0)),
                pl.BlockSpec((H, C), lambda g: (0, 0)),
                pl.BlockSpec((1, Bt * C), lambda g: (0, 0)),
            ],
            out_specs=pl.BlockSpec((1, N, Bt * C), lambda g: (g, 0, 0)),
        ),
        compiler_params=pltpu.CompilerParams(
            dimension_semantics=("parallel",),
            vmem_limit_bytes=vmem_limit,
        ),
    )(x_t, adj_bf, w1_bf, b1_t, w2_bf, b2_t)

    # Un-fuse the lane-packed output back to (B, N, C): layout plumbing only.
    out = out_slab.reshape(G, N, Bt, C).transpose(0, 2, 1, 3).reshape(B, N, C)
    return out


def sdee_reference_f32(x, adj, w1, b1, w2, b2):
    xm = jnp.mean(x, axis=2)
    h = jnp.einsum("nm,bmh->bnh", adj, jnp.einsum("bnf,fh->bnh", xm, w1)) + b1
    h = jnp.maximum(h, 0.0)
    return jnp.einsum("nm,bmc->bnc", adj, jnp.einsum("bnh,hc->bnc", h, w2)) + b2


def sdee_reference_bf16(x, adj, w1, b1, w2, b2):
    # Mirrors the kernel's bf16-operand / f32-accumulate numerics.
    bf = lambda a: a.astype(jnp.bfloat16)
    T = x.shape[2]
    xs = jnp.sum(x.astype(jnp.float32), axis=2)
    w1s = w1.astype(jnp.float32) / float(T)
    s1 = jnp.einsum("bnf,fh->bnh", bf(xs), bf(w1s),
                    preferred_element_type=jnp.float32)
    h = jnp.einsum("nm,bmh->bnh", bf(adj), bf(s1),
                   preferred_element_type=jnp.float32) + b1
    h = jnp.maximum(h, 0.0)
    s2 = jnp.einsum("bnh,hc->bnc", bf(h), bf(w2),
                    preferred_element_type=jnp.float32)
    return jnp.einsum("nm,bmc->bnc", bf(adj), bf(s2),
                      preferred_element_type=jnp.float32) + b2


if __name__ == "__main__":
    # Small shapes consistent with the forward pass (B chosen so batch fusion
    # still leaves >= 2 parallel grid steps).
    B, N, T = 8, 16, 4
    nfeat, nhid, nclass = 32, 32, 16

    key = jax.random.PRNGKey(0)
    kx, kadj, kw1, kb1, kw2, kb2 = jax.random.split(key, 6)

    x = jax.random.normal(kx, (B, N, T, nfeat), dtype=jnp.float32)

    # Row-normalized adjacency.
    a = jax.random.uniform(kadj, (N, N), dtype=jnp.float32)
    a = a + jnp.eye(N, dtype=jnp.float32)
    adj = a / jnp.sum(a, axis=1, keepdims=True)

    # Parameter init matching GraphConvolution.reset_parameters.
    stdv1 = 1.0 / (nhid ** 0.5)
    w1 = jax.random.uniform(kw1, (nfeat, nhid), minval=-stdv1, maxval=stdv1,
                            dtype=jnp.float32)
    b1 = jax.random.uniform(kb1, (nhid,), minval=-stdv1, maxval=stdv1,
                            dtype=jnp.float32)
    stdv2 = 1.0 / (nclass ** 0.5)
    w2 = jax.random.uniform(kw2, (nhid, nclass), minval=-stdv2, maxval=stdv2,
                            dtype=jnp.float32)
    b2 = jax.random.uniform(kb2, (nclass,), minval=-stdv2, maxval=stdv2,
                            dtype=jnp.float32)

    # Bt=4 -> grid=(2,): Bt*N=64 rows, Bt*H=128 lane-dense adj matmul, 2 TC steps.
    out = sdee_forward(x, adj, w1, b1, w2, b2, batch_tile=4)
    out = jax.block_until_ready(out)
    assert out.shape == (B, N, nclass), out.shape

    ref_bf16 = sdee_reference_bf16(x, adj, w1, b1, w2, b2)
    ref_f32 = sdee_reference_f32(x, adj, w1, b1, w2, b2)
    err_bf16 = float(jnp.max(jnp.abs(out - ref_bf16)))
    err_f32 = float(jnp.max(jnp.abs(out - ref_f32)))
    # Tight check against a bf16-emulating reference, loose check vs pure f32.
    assert jnp.allclose(out, ref_bf16, atol=2e-3, rtol=2e-3), err_bf16
    assert jnp.allclose(out, ref_f32, atol=3e-2, rtol=3e-2), err_f32

    print("KERNEL_OK")
</pallas_src>

<mosaic_0001>
module attributes {stable_mosaic.version = 11 : i64} {
  func.func @sdee_kernel(%arg0: i32, %arg1: memref<4x4x16x32xf32, #tpu.memory_space<vmem>>, %arg2: memref<16x16xbf16, #tpu.memory_space<vmem>>, %arg3: memref<32x32xbf16, #tpu.memory_space<vmem>>, %arg4: memref<1x128xf32, #tpu.memory_space<vmem>>, %arg5: memref<32x16xbf16, #tpu.memory_space<vmem>>, %arg6: memref<1x64xf32, #tpu.memory_space<vmem>>, %arg7: memref<1x16x64xf32, #tpu.memory_space<vmem>>) attributes {dimension_semantics = [#tpu.dimension_semantics<parallel>], iteration_bounds = array<i64: 2>, scalar_prefetch = 0 : i64, scratch_operands = 0 : i64, tpu.core_type = #tpu.core_type<tc>, window_params = [{transform_indices = @transform_0, window_bounds = array<i64: 4, 4, 16, 32>}, {pipeline_mode = #tpu.pipeline_mode<synchronous>, transform_indices = @transform_1, window_bounds = array<i64: 16, 16>}, {pipeline_mode = #tpu.pipeline_mode<synchronous>, transform_indices = @transform_2, window_bounds = array<i64: 32, 32>}, {pipeline_mode = #tpu.pipeline_mode<synchronous>, transform_indices = @transform_3, window_bounds = array<i64: 1, 128>}, {pipeline_mode = #tpu.pipeline_mode<synchronous>, transform_indices = @transform_4, window_bounds = array<i64: 32, 16>}, {pipeline_mode = #tpu.pipeline_mode<synchronous>, transform_indices = @transform_5, window_bounds = array<i64: 1, 64>}, {transform_indices = @transform_6, window_bounds = array<i64: 1, 16, 64>}]} {
    %c0 = arith.constant 0 : index
    %c0_0 = arith.constant 0 : index
    %c0_1 = arith.constant 0 : index
    %c0_2 = arith.constant 0 : index
    %0 = vector.load %arg1[%c0, %c0_0, %c0_1, %c0_2] : memref<4x4x16x32xf32, #tpu.memory_space<vmem>>, vector<4x4x16x32xf32>
    %cst = arith.constant dense<0.000000e+00> : vector<4x16x32xf32>
    %1 = vector.multi_reduction <add>, %0, %cst [1] : vector<4x4x16x32xf32> to vector<4x16x32xf32>
    %2 = vector.shape_cast %1 : vector<4x16x32xf32> to vector<64x32xf32>
    %3 = arith.truncf %2 : vector<64x32xf32> to vector<64x32xbf16>
    %c0_3 = arith.constant 0 : index
    %c0_4 = arith.constant 0 : index
    %4 = vector.load %arg3[%c0_3, %c0_4] : memref<32x32xbf16, #tpu.memory_space<vmem>>, vector<32x32xbf16>
    %cst_5 = arith.constant dense<0.000000e+00> : vector<64x32xf32>
    %5 = tpu.matmul %3, %4, %cst_5 {dimension_numbers = #tpu.dot_dimension_numbers<[1], [0], [0], [1], [0, 0, 1, 1], [], []>} : vector<64x32xbf16>, vector<32x32xbf16>, vector<64x32xf32> -> vector<64x32xf32>
    %6 = vector.extract_strided_slice %5 {offsets = [0, 0], sizes = [16, 32], strides = [1, 1]} : vector<64x32xf32> to vector<16x32xf32>
    %7 = vector.extract_strided_slice %5 {offsets = [16, 0], sizes = [16, 32], strides = [1, 1]} : vector<64x32xf32> to vector<16x32xf32>
    %8 = vector.extract_strided_slice %5 {offsets = [32, 0], sizes = [16, 32], strides = [1, 1]} : vector<64x32xf32> to vector<16x32xf32>
    %9 = vector.extract_strided_slice %5 {offsets = [48, 0], sizes = [16, 32], strides = [1, 1]} : vector<64x32xf32> to vector<16x32xf32>
    %10 = tpu.concatenate %6, %7, %8, %9 in 1 : vector<16x32xf32>, vector<16x32xf32>, vector<16x32xf32>, vector<16x32xf32> -> vector<16x128xf32>
    %c0_6 = arith.constant 0 : index
    %c0_7 = arith.constant 0 : index
    %11 = vector.load %arg2[%c0_6, %c0_7] : memref<16x16xbf16, #tpu.memory_space<vmem>>, vector<16x16xbf16>
    %12 = arith.truncf %10 : vector<16x128xf32> to vector<16x128xbf16>
    %cst_8 = arith.constant dense<0.000000e+00> : vector<16x128xf32>
    %13 = tpu.matmul %11, %12, %cst_8 {dimension_numbers = #tpu.dot_dimension_numbers<[1], [0], [0], [1], [0, 0, 1, 1], [], []>} : vector<16x16xbf16>, vector<16x128xbf16>, vector<16x128xf32> -> vector<16x128xf32>
    %c0_9 = arith.constant 0 : index
    %c0_10 = arith.constant 0 : index
    %14 = vector.load %arg4[%c0_9, %c0_10] : memref<1x128xf32, #tpu.memory_space<vmem>>, vector<1x128xf32>
    %15 = vector.broadcast %14 : vector<1x128xf32> to vector<16x128xf32>
    %16 = arith.addf %13, %15 : vector<16x128xf32>
    %cst_11 = arith.constant 0.000000e+00 : f32
    %17 = vector.broadcast %cst_11 : f32 to vector<16x128xf32>
    %18 = arith.maximumf %16, %17 : vector<16x128xf32>
    %19 = vector.extract_strided_slice %18 {offsets = [0, 0], sizes = [16, 32], strides = [1, 1]} : vector<16x128xf32> to vector<16x32xf32>
    %20 = vector.extract_strided_slice %18 {offsets = [0, 32], sizes = [16, 32], strides = [1, 1]} : vector<16x128xf32> to vector<16x32xf32>
    %21 = vector.extract_strided_slice %18 {offsets = [0, 64], sizes = [16, 32], strides = [1, 1]} : vector<16x128xf32> to vector<16x32xf32>
    %22 = vector.extract_strided_slice %18 {offsets = [0, 96], sizes = [16, 32], strides = [1, 1]} : vector<16x128xf32> to vector<16x32xf32>
    %23 = tpu.concatenate %19, %20, %21, %22 in 0 : vector<16x32xf32>, vector<16x32xf32>, vector<16x32xf32>, vector<16x32xf32> -> vector<64x32xf32>
    %24 = arith.truncf %23 : vector<64x32xf32> to vector<64x32xbf16>
    %c0_12 = arith.constant 0 : index
    %c0_13 = arith.constant 0 : index
    %25 = vector.load %arg5[%c0_12, %c0_13] : memref<32x16xbf16, #tpu.memory_space<vmem>>, vector<32x16xbf16>
    %cst_14 = arith.constant dense<0.000000e+00> : vector<64x16xf32>
    %26 = tpu.matmul %24, %25, %cst_14 {dimension_numbers = #tpu.dot_dimension_numbers<[1], [0], [0], [1], [0, 0, 1, 1], [], []>} : vector<64x32xbf16>, vector<32x16xbf16>, vector<64x16xf32> -> vector<64x16xf32>
    %27 = vector.extract_strided_slice %26 {offsets = [0, 0], sizes = [16, 16], strides = [1, 1]} : vector<64x16xf32> to vector<16x16xf32>
    %28 = vector.extract_strided_slice %26 {offsets = [16, 0], sizes = [16, 16], strides = [1, 1]} : vector<64x16xf32> to vector<16x16xf32>
    %29 = vector.extract_strided_slice %26 {offsets = [32, 0], sizes = [16, 16], strides = [1, 1]} : vector<64x16xf32> to vector<16x16xf32>
    %30 = vector.extract_strided_slice %26 {offsets = [48, 0], sizes = [16, 16], strides = [1, 1]} : vector<64x16xf32> to vector<16x16xf32>
    %31 = tpu.concatenate %27, %28, %29, %30 in 1 : vector<16x16xf32>, vector<16x16xf32>, vector<16x16xf32>, vector<16x16xf32> -> vector<16x64xf32>
    %c0_15 = arith.constant 0 : index
    %c0_16 = arith.constant 0 : index
    %32 = vector.load %arg2[%c0_15, %c0_16] : memref<16x16xbf16, #tpu.memory_space<vmem>>, vector<16x16xbf16>
    %33 = arith.truncf %31 : vector<16x64xf32> to vector<16x64xbf16>
    %cst_17 = arith.constant dense<0.000000e+00> : vector<16x64xf32>
    %34 = tpu.matmul %32, %33, %cst_17 {dimension_numbers = #tpu.dot_dimension_numbers<[1], [0], [0], [1], [0, 0, 1, 1], [], []>} : vector<16x16xbf16>, vector<16x64xbf16>, vector<16x64xf32> -> vector<16x64xf32>
    %c0_18 = arith.constant 0 : index
    %c0_19 = arith.constant 0 : index
    %35 = vector.load %arg6[%c0_18, %c0_19] : memref<1x64xf32, #tpu.memory_space<vmem>>, vector<1x64xf32>
    %36 = vector.broadcast %35 : vector<1x64xf32> to vector<16x64xf32>
    %37 = arith.addf %34, %36 : vector<16x64xf32>
    %c0_20 = arith.constant 0 : index
    %c0_21 = arith.constant 0 : index
    %c0_22 = arith.constant 0 : index
    %38 = vector.load %arg7[%c0_20, %c0_21, %c0_22] : memref<1x16x64xf32, #tpu.memory_space<vmem>>, vector<1x16x64xf32>
    %39 = vector.shape_cast %38 : vector<1x16x64xf32> to vector<16x64xf32>
    %40 = vector.shape_cast %37 : vector<16x64xf32> to vector<1x16x64xf32>
    tpu.vector_store %arg7[%c0_20, %c0_21, %c0_22], %40 {strides = array<i32>} : memref<1x16x64xf32, #tpu.memory_space<vmem>>, vector<1x16x64xf32>,
    return
  }
  func.func @transform_0(%arg0: i32) -> (i32, i32, i32, i32) {
    %c0_i32 = arith.constant 0 : i32
    %c0_i32_0 = arith.constant 0 : i32
    %c0_i32_1 = arith.constant 0 : i32
    %c0_i32_2 = arith.constant 0 : i32
    return %arg0, %c0_i32, %c0_i32_0, %c0_i32_1 : i32, i32, i32, i32
  }
  func.func @transform_1(%arg0: i32) -> (i32, i32) {
    %c0_i32 = arith.constant 0 : i32
    %c0_i32_0 = arith.constant 0 : i32
    %c0_i32_1 = arith.constant 0 : i32
    return %c0_i32, %c0_i32_0 : i32, i32
  }
  func.func @transform_2(%arg0: i32) -> (i32, i32) {
    %c0_i32 = arith.constant 0 : i32
    %c0_i32_0 = arith.constant 0 : i32
    %c0_i32_1 = arith.constant 0 : i32
    return %c0_i32, %c0_i32_0 : i32, i32
  }
  func.func @transform_3(%arg0: i32) -> (i32, i32) {
    %c0_i32 = arith.constant 0 : i32
    %c0_i32_0 = arith.constant 0 : i32
    %c0_i32_1 = arith.constant 0 : i32
    return %c0_i32, %c0_i32_0 : i32, i32
  }
  func.func @transform_4(%arg0: i32) -> (i32, i32) {
    %c0_i32 = arith.constant 0 : i32
    %c0_i32_0 = arith.constant 0 : i32
    %c0_i32_1 = arith.constant 0 : i32
    return %c0_i32, %c0_i32_0 : i32, i32
  }
  func.func @transform_5(%arg0: i32) -> (i32, i32) {
    %c0_i32 = arith.constant 0 : i32
    %c0_i32_0 = arith.constant 0 : i32
    %c0_i32_1 = arith.constant 0 : i32
    return %c0_i32, %c0_i32_0 : i32, i32
  }
  func.func @transform_6(%arg0: i32) -> (i32, i32, i32) {
    %c0_i32 = arith.constant 0 : i32
    %c0_i32_0 = arith.constant 0 : i32
    %c0_i32_1 = arith.constant 0 : i32
    return %arg0, %c0_i32, %c0_i32_0 : i32, i32, i32
  }
}

</mosaic_0001>

<bundles_post_ra>
// kernel: tpu_custom_call.1
= control target key start
LH: loop header
LB: loop body
LE: loop exit
PB: predicated region body
PF: predicated region fallthrough
CT: control target
= control target key end

     0   :  { %11 = vsyncpa [#allocation3], 0  ;;  %s1460_s0 = inlined_call_operand.hbm [shape: f32[8,4,16,32], index: 0, kind: input, shape index: {}]   ;;  %s1461_s1 = inlined_call_operand.vmem [shape: bf16[16,16], index: 1, kind: input, shape index: {}]   ;;  %s1462_s2 = inlined_call_operand.vmem [shape: bf16[32,32], index: 2, kind: input, shape index: {}]   ;;  %s1463_s3 = inlined_call_operand.vmem [shape: f32[1,128], index: 3, kind: input, shape index: {}]   ;;  %s1464_s4 = inlined_call_operand.vmem [shape: bf16[32,16], index: 4, kind: input, shape index: {}]   ;;  %s1465_s5 = inlined_call_operand.vmem [shape: f32[1,64], index: 5, kind: input, shape index: {}]   ;;  %s1466_s6 = inlined_call_operand.hbm [shape: f32[2,16,64], index: 6, kind: output, shape index: {}]  }
   0x1   :  { %13 = vsyncpa [#allocation3 + $0x1], 0 }
   0x2   :  { %14 = vsyncpa [#allocation4], 0 }
   0x3   :  { %16 = vsyncpa [#allocation4 + $0x1], 0  ;;  %s1179_s21 = smov 0   ;;  %s1181_s22 = smov 0  }
   0x4   :  { %s1183_s23 = smov 0   ;;  %s1185_s24 = smov 0  }
   0x5 LB: > { %s1200_s25 = sadd.s32 4294967295, %s1129_s24   ;;  %s839_s26 = sadd.s32 4294967294, %s1129_s24   ;;  %s1129_s24 = sphi %s1185_s24, %s1479_s24   ;;  %s1125_s23 = sphi %s1183_s23, %s1478_s23   ;;  %s1121_s22 = sphi %s1181_s22, %s1477_s22   ;;  %s1117_s21 = sphi %s1179_s21, %s1476_s21  }
   0x6   : > { %s1204_s27 = sadd.s32 1, %s1129_s24   ;;  %s29_s28 = sadd.s32 1, %s1125_s23 }
   0x7   : > { %s26_s29 = ssub.s32 %s1129_s24, %s1204_s27  ;;  %p36_p0 = scmp.ne.s32.totalorder %s1125_s23, %s1121_s22 }
   0x8   : > { %p27_p1 = scmp.eq.s32.totalorder %s26_s29, 0  ;;  %p37_p2 = scmp.eq.s32.totalorder %s1129_s24, 0 }
   0x9   : > { %p42_p3 = scmp.ne.s32.totalorder %s1121_s22, %s1117_s21  ;;  %p43_p4 = scmp.eq.s32.totalorder %s1200_s25, 0 }
   0xa   : > { %s1216_s30 = scalar_select %p27_p1, %s1125_s23, %s29_s28  }
   0xb   : > { %p1218_p5 = por %p37_p2, %p36_p0  ;;  %p1222_p6 = por %p43_p4, %p42_p3 }
   0xc   : > { %p171_p7 = scmp.eq.s32.totalorder %s1200_s25, 1  ;;  %p177_p8 = scmp.eq.s32.totalorder %s839_s26, 1 }
   0xd   : > { %p938_p10 = scmp.lt.s32.totalorder %s1129_s24, 2  ;;  %s212_s11 = sand.u32 1, %s1125_s23  }
   0xe   : > { %p1229_p11 = por %p171_p7, %p36_p0  ;;  %p1233_p12 = por %p177_p8, %p42_p3 }
   0xf   : > { %s872_s12 = sshll.u32 %s1129_s24, 12  ;;  %s842_s13 = sshll.u32 %s212_s11, 8 }
  0x10   : > { %s1470_s9 = scalar_select %p1229_p11, 1, 0 }
  0x11   : > { %s1471_s10 = scalar_select %p1233_p12, 1, 0 }
  0x12   : > { %s1242_s16 = scalar_lea.hbm %s1460_s0, %s872_s12  ;;  %s216_s17 = scalar_lea.vmem [#allocation2], %s842_s13 }
  0x13   : > { %s224_s18 = sshll.u32 %s216_s17, 4  ;;  %p1246_p13 = pnand %p938_p10, %p1218_p5  ;;  %s1250_s18 = int_to_ptr.vmem [resolvable:$true] %s224_s18 }
  0x14   : > { %s1252_s20 = scalar_lea.sflag [#allocation3], %s212_s11  ;;  %s1033_s26 = scalar_lea.hbm %s1242_s16, 4096 }
  0x15   : > { %p1034_p0 = scmp.ne.s32.totalorder %s1242_s16, %s1033_s26  ;;  %p1035_p1 = pneg %p1246_p13 }
  0x16   : > { %s1038_s7 = scalar_lea.hbm %s1460_s0, 8192  ;;  %p1039_p4 = scmp.lt.u32.totalorder %s1242_s16, %s1460_s0 }
  0x17   : > { %p1036_p2 = pnand %p1035_p1, %p1034_p0  ;;  %p1040_p5 = scmp.lt.u32.totalorder %s1038_s7, %s1033_s26 }
  0x18   : > { %p1042_p8 = scmp.lt.u32.totalorder %s1033_s26, %s1242_s16 }
  0x19   : > { %p1037_p3 = pneg %p1036_p2  ;;  %p1041_p7 = por %p1040_p5, %p1039_p4 }
  0x1b   : > { %p1043_p10 = por %p1042_p8, %p1041_p7 }
  0x1d   : > { %p1044_p9 = pnand %p1043_p10, %p1037_p3 }
  0x1f   : > { %1047 = shalt.err (!%p1044_p9)
}
  0x20   : > { %s1048_s11 = scalar_lea.vmem %s1250_s18, 4096  ;;  %s1131_s14 = smov [#allocation2]  }
  0x21   : > { %p1049_p0 = scmp.ne.s32.totalorder %s1250_s18, %s1048_s11  ;;  %s1053_s15 = sshll.u32 %s1131_s14, 4  ;;  %s1054_s15 = int_to_ptr.vmem [resolvable:$false] %s1053_s15 }
  0x22   : > { %s1055_s17 = scalar_lea.vmem %s1054_s15, 8192  ;;  %p1056_p11 = scmp.lt.s32.totalorder %s1250_s18, %s1054_s15 }
  0x23   : > { %p1051_p2 = pnand %p1049_p0, %p1035_p1  ;;  %p1057_p4 = scmp.lt.s32.totalorder %s1055_s17, %s1048_s11 }
  0x25   : > { %p1052_p12 = pneg %p1051_p2  ;;  %p1058_p5 = por %p1057_p4, %p1056_p11 }
  0x27   : > { %p1059_p7 = pnand %p1058_p5, %p1052_p12 }
  0x29   : > { %1062 = shalt.err (!%p1059_p7)
}
  0x2a   : > { %s1132_s26 = smov 128   ;;  %s1133_s28 = smov 8  }
  0x2b   : > { %933 = dma.hbm_to_vmem [thread:$0]  (!%p1246_p13), %s1242_s16, 4096, %s1250_s18, %s1252_s20, %s1132_s26, %s1132_s26, %s1133_s28  }
  0x2c   : > { %p846_p9 = scmp.ge.s32.totalorder %s1129_s24, 1  ;;  %p232_p1 = scmp.lt.s32.totalorder %s1129_s24, 3 }
  0x2e   : > { %p233_p3 = pnand %p846_p9, %p232_p1 }
  0x2f   : > { %s1283_s29 = sand.u32 (!%p233_p3), 1, %s1121_s22  }
  0x30   : > { %236 = sbr.rel (%p233_p3) target bundleno = 1339 (0x53b), region = 44  ;;  %s847_s7 = sshll.u32 (!%p233_p3), %s1283_s29, 8 }
  0x31   : > { %s239_s12 = scalar_lea.sflag (!%p233_p3), [#allocation3], %s1283_s29  ;;  %s1287_s13 = scalar_lea.vmem (!%p233_p3), [#allocation2], %s847_s7 }
  0x37   : > { %1108 = dma.done.wait (%p1222_p6), %s239_s12, 4096  }
  0x38   : > { %1110 = vsyncadd (%p1222_p6), %s239_s12, 4294963200  ;;  %v1028_v0 = vld [vmem:[%s1462_s2] sm:$0xff]   ;;  %vm305_vm0 = vcmask 261120   ;;  %v1029_v1 = vld [vmem:[%s1462_s2 + $0x8] sm:$0xff]   ;;  %s1135_s8 = smov 32   ;;  %vm1136_vm1 = vmmov 0  }
  0x39   : > { %890 = vmatprep.subr.bf16.mxu0 %v1028_v0  ;;  %v273_v2 = vld [vmem:[%s1287_s13] sm:$0xff]  ;;  %v274_v3 = vld [vmem:[%s1287_s13 + $0x8] sm:$0xff]  ;;  %v275_v4 = vld [vmem:[%s1287_s13 + $0x10] sm:$0xff]  ;;  %s1137_s11 = smov 96   ;;  %s1138_s14 = smov 64   ;;  %vm485_vm2 = vcmask 523264  }
  0x3a   : > { %891 = vmatpush3.bf16.msra.mxu0 %v1028_v0  ;;  %v276_v5 = vld [vmem:[%s1287_s13 + $0x18] sm:$0xff]  ;;  %v277_v6 = vld [vmem:[%s1287_s13 + $0x20] sm:$0xff]  ;;  %v278_v7 = vld [vmem:[%s1287_s13 + $0x28] sm:$0xff]  ;;  %v306_v8 = vsel %vm305_vm0, %v273_v2, 0.0  ;;  %v307_v9 = vsel %vm305_vm0, %v275_v4, 0.0  ;;  %v313_v10 = vsel %vm305_vm0, %v274_v3, 0.0 }
  0x3b   : > { %892 = vmatprep.subr.bf16.mxu0 %v1029_v1  ;;  %v279_v11 = vld [vmem:[%s1287_s13 + $0x30] sm:$0xff]  ;;  %v280_v12 = vld [vmem:[%s1287_s13 + $0x38] sm:$0xff]  ;;  %v308_v13 = vadd.f32 %v307_v9, %v306_v8  ;;  %v309_v14 = vsel %vm305_vm0, %v277_v6, 0.0  ;;  %v314_v15 = vsel %vm305_vm0, %v276_v5, 0.0  ;;  %v316_v16 = vsel %vm305_vm0, %v278_v7, 0.0  ;;  %v281_v17 = vld [vmem:[%s1287_s13 + $0x40] sm:$0xff] }
  0x3c   : > { %v311_v18 = vsel %vm305_vm0, %v279_v11, 0.0  ;;  %v315_v19 = vadd.f32 %v314_v15, %v313_v10  ;;  %v318_v20 = vsel %vm305_vm0, %v280_v12, 0.0  ;;  %v282_v21 = vld [vmem:[%s1287_s13 + $0x48] sm:$0xff]  ;;  %v283_v22 = vld [vmem:[%s1287_s13 + $0x50] sm:$0xff]  ;;  %v284_v23 = vld [vmem:[%s1287_s13 + $0x58] sm:$0xff]  ;;  %v320_v24 = vsel %vm305_vm0, %v281_v17, 0.0 }
  0x3d   : > { %v310_v25 = vadd.f32 %v309_v14, %v308_v13  ;;  %v285_v26 = vld [vmem:[%s1287_s13 + $0x60] sm:$0xff]  ;;  %v286_v27 = vld [vmem:[%s1287_s13 + $0x68] sm:$0xff]  ;;  %v287_v28 = vld [vmem:[%s1287_s13 + $0x70] sm:$0xff]  ;;  %v321_v29 = vsel %vm305_vm0, %v283_v22, 0.0  ;;  %v327_v30 = vsel %vm305_vm0, %v282_v21, 0.0  ;;  %v328_v31 = vsel %vm305_vm0, %v284_v23, 0.0 }
  0x3e   : > { %893 = vmatpush3.bf16.msra.mxu0 %v1029_v1  ;;  %v317_v32 = vadd.f32 %v316_v16, %v315_v19  ;;  %v288_v33 = vld [vmem:[%s1287_s13 + $0x78] sm:$0xff]  ;;  %v322_v34 = vadd.f32 %v321_v29, %v320_v24  ;;  %v323_v35 = vsel %vm305_vm0, %v285_v26, 0.0  ;;  %v325_v36 = vsel %vm305_vm0, %v287_v28, 0.0  ;;  %v289_v37 = vld [vmem:[%s1287_s13 + $0x80] sm:$0xff]  ;;  %v290_v38 = vld [vmem:[%s1287_s13 + $0x88] sm:$0xff]  ;;  %s1139_s18 = smov 16  }
  0x3f   : > { %v312_v39 = vadd.f32 %v311_v18, %v310_v25  ;;  %v329_v40 = vadd.f32 %v328_v31, %v327_v30  ;;  %v330_v41 = vsel %vm305_vm0, %v286_v27, 0.0  ;;  %v332_v42 = vsel %vm305_vm0, %v288_v33, 0.0  ;;  %v291_v43 = vld [vmem:[%s1287_s13 + $0x90] sm:$0xff]  ;;  %v292_v44 = vld [vmem:[%s1287_s13 + $0x98] sm:$0xff]  ;;  %v293_v45 = vld [vmem:[%s1287_s13 + $0xa0] sm:$0xff]  ;;  %s1140_s19 = smov 48  }
  0x40   : > { %v319_v46 = vadd.f32 %v318_v20, %v317_v32  ;;  %v324_v47 = vadd.f32 %v323_v35, %v322_v34  ;;  %v294_v48 = vld [vmem:[%s1287_s13 + $0xa8] sm:$0xff]  ;;  %v295_v49 = vld [vmem:[%s1287_s13 + $0xb0] sm:$0xff]  ;;  %v296_v50 = vld [vmem:[%s1287_s13 + $0xb8] sm:$0xff]  ;;  %v334_v51 = vsel %vm305_vm0, %v289_v37, 0.0  ;;  %v335_v52 = vsel %vm305_vm0, %v291_v43, 0.0  ;;  %s848_s20 = sshll.u32 %s1283_s29, 4 }
  0x41   : > { %v331_v53 = vadd.f32 %v330_v41, %v329_v40  ;;  %v336_v54 = vadd.f32 %v335_v52, %v334_v51  ;;  %v337_v55 = vsel %vm305_vm0, %v293_v45, 0.0  ;;  %v339_v56 = vsel %vm305_vm0, %v295_v49, 0.0  ;;  %v297_v57 = vld [vmem:[%s1287_s13 + $0xc0] sm:$0xff]  ;;  %v298_v58 = vld [vmem:[%s1287_s13 + $0xc8] sm:$0xff]  ;;  %v299_v59 = vld [vmem:[%s1287_s13 + $0xd0] sm:$0xff]  ;;  %s873_s17 = sshll.u32 %s1200_s25, 8 }
  0x42   : > { %v362_v60 = vpack.c.bf16 %v319_v46, %v312_v39  ;;  %v326_v61 = vadd.f32 %v325_v36, %v324_v47  ;;  %v341_v62 = vsel %vm305_vm0, %v290_v38, 0.0  ;;  %v342_v63 = vsel %vm305_vm0, %v292_v44, 0.0  ;;  %v300_v0 = vld [vmem:[%s1287_s13 + $0xd8] sm:$0xff]  ;;  %v301_v1 = vld [vmem:[%s1287_s13 + $0xe0] sm:$0xff]  ;;  %v302_v2 = vld [vmem:[%s1287_s13 + $0xe8] sm:$0xff]  ;;  %s1414_s7 = scalar_lea.hbm %s1466_s6, %s873_s17  ;;  %s753_s25 = scalar_lea.sflag [#allocation4], %s1283_s29 }
  0x43   : > { %v333_v3 = vadd.f32 %v332_v42, %v331_v53  ;;  %v338_v4 = vadd.f32 %v337_v55, %v336_v54  ;;  %v343_v5 = vadd.f32 %v342_v63, %v341_v62  ;;  %v344_v6 = vsel %vm305_vm0, %v294_v48, 0.0  ;;  %v303_v7 = vld [vmem:[%s1287_s13 + $0xf0] sm:$0xff]  ;;  %v304_v8 = vld [vmem:[%s1287_s13 + $0xf8] sm:$0xff]  ;;  %p1473_p11 = scmp.ne.s32.totalorder %s1470_s9, 0  ;;  %s1141_s13 = smov [#allocation5]  }
  0x44   : > { %894 = vmatprep.mubr.msk.bf16.mxu0 %vm305_vm0, %v362_v60  ;;  %v346_v9 = vsel %vm305_vm0, %v296_v50, 0.0  ;;  %v348_v10 = vsel %vm305_vm0, %v297_v57, 0.0  ;;  %v349_v11 = vsel %vm305_vm0, %v299_v59, 0.0  ;;  %v351_v12 = vsel %vm305_vm0, %v301_v1, 0.0  ;;  %v1031_v59 = vld [vmem:[%s1464_s4] sm:$0xff]   ;;  %v1032_v60 = vld [vmem:[%s1464_s4 + $0x8] sm:$0xff]  }
  0x45   : > { %v363_v13 = vpack.c.bf16 %v333_v3, %v326_v61  ;;  %v340_v14 = vadd.f32 %v339_v56, %v338_v4  ;;  %v345_v15 = vadd.f32 %v344_v6, %v343_v5  ;;  %v350_v16 = vadd.f32 %v349_v11, %v348_v10  ;;  %v855_v61 = vld [vmem:[%s1463_s3] ss:$0 sm:$0xff]  ;;  %s1067_s16 = sshll.u32 %s1141_s13, 4  ;;  %s1068_s16 = int_to_ptr.vmem [resolvable:$false] %s1067_s16 }
  0x46   : > { %v353_v17 = vsel %vm305_vm0, %v303_v7, 0.0  ;;  %v355_v18 = vsel %vm305_vm0, %v298_v58, 0.0  ;;  %v356_v19 = vsel %vm305_vm0, %v300_v0, 0.0  ;;  %v358_v20 = vsel %vm305_vm0, %v302_v2, 0.0  ;;  %v1377_v58 = vld [vmem:[%s1461_s1] sm:$0xff]  }
  0x47   : > { %895 = vmatmul.mubr.msk.bf16.vlgmr.msra.gmra.mrb[0].mxu0 %vm305_vm0, %v363_v13  ;;  %v347_v21 = vadd.f32 %v346_v9, %v345_v15  ;;  %v352_v22 = vadd.f32 %v351_v12, %v350_v16  ;;  %v357_v23 = vadd.f32 %v356_v19, %v355_v18  ;;  %v360_v24 = vsel %vm305_vm0, %v304_v8, 0.0 }
  0x48   : > { %v1134_v33 = vmov 0.0   ;;  %vm488_vm3 = vcmask 785408   ;;  %vm506_vm4 = vcmask 130048   ;;  %vm698_vm5 = vcmask 392192  }
  0x49   : > { %v364_v25 = vpack.c.bf16 %v347_v21, %v340_v14  ;;  %v354_v26 = vadd.f32 %v353_v17, %v352_v22  ;;  %v359_v27 = vadd.f32 %v358_v20, %v357_v23  ;;  %902 = vmatprep.subr.bf16.mxu1 %v1134_v33  ;;  %920 = vmatprep.subr.bf16.mxu0 %v1134_v33 }
  0x4a   : > { %904 = vmatprep.mubr.msk.bf16.mxu1 %vm1136_vm1, %v1134_v33 }
  0x4b   : > { %898 = vmatprep.mubr.msk.bf16.mxu0 %vm305_vm0, %v364_v25  ;;  %v361_v28 = vadd.f32 %v360_v24, %v359_v27 }
  0x4d   : > { %v365_v29 = vpack.c.bf16 %v361_v28, %v354_v26 }
  0x4f   : > { %899 = vmatmul.mubr.msk.bf16.gmra.mrb[4].mxu0 %vm305_vm0, %v365_v29 }
  0x50   : > { %922 = vmatprep.mubr.msk.bf16.mxu0 %vm1136_vm1, %v1134_v33 }
 0x11a   : > { %v896_v30 = vpop.f32.mrb[0].mxu0 }
 0x11b   : > { %v428_v31 = vpop.f32.mrb[1].mxu0 }
 0x11c   : > { %v897_v32 = vpop.f32.mrb[2].mxu0 }
 0x11d   : > { %v983_v34 = vpack.i.bf16 %v897_v32, %v896_v30  ;;  %v431_v35 = vpop.f32.mrb[3].mxu0 }
 0x11f   : > { %984 = vrot.lane.b32.xlu0 %v983_v34, %s1135_s8 }
 0x122   : > { %v900_v36 = vpop.f32.mrb[4].mxu0 }
 0x123   : > { %v444_v37 = vpop.f32.mrb[5].mxu0 }
 0x124   : > { %v901_v38 = vpop.f32.mrb[6].mxu0 }
 0x125   : > { %v993_v39 = vpack.i.bf16 %v901_v38, %v900_v36  ;;  %v447_v40 = vpop.f32.mrb[7].mxu0 }
 0x126   : > { %v988_v41 = vpack.i.bf16 %v447_v40, %v444_v37 }
 0x127   : > { %994 = vrot.lane.b32.xlu1 %v993_v39, %s1137_s11 }
 0x128   : > { %989 = vrot.lane.b32.xlu0 %v988_v41, %s1138_s14 }
 0x191   : > { %v985_v42 = vpop.permute.xlu0 %984 }
 0x192   : > { %v987_v43 = vunpack.i.h.bf16 %v985_v42  ;;  %v986_v44 = vunpack.i.l.bf16 %v985_v42 }
 0x194   : > { %v483_v49 = vsel %vm305_vm0, %v428_v31, %v986_v44  ;;  %v484_v50 = vsel %vm305_vm0, %v431_v35, %v987_v43 }
 0x199   : > { %v995_v45 = vpop.permute.xlu1 %994 }
 0x19a   : > { %v990_v46 = vpop.permute.xlu0 %989  ;;  %v997_v51 = vunpack.i.h.bf16 %v995_v45  ;;  %v996_v52 = vunpack.i.l.bf16 %v995_v45 }
 0x19b   : > { %v992_v47 = vunpack.i.h.bf16 %v990_v46  ;;  %v991_v48 = vunpack.i.l.bf16 %v990_v46 }
 0x19d   : > { %v486_v53 = vsel %vm485_vm2, %v483_v49, %v991_v48  ;;  %v487_v54 = vsel %vm485_vm2, %v484_v50, %v992_v47  ;;  %v864_v47 = vld [vmem:[%s1465_s5] ss:$0 sm:$0xff] }
 0x19e   : > { %v489_v55 = vsel %vm488_vm3, %v486_v53, %v996_v52  ;;  %v490_v56 = vsel %vm488_vm3, %v487_v54, %v997_v51 }
 0x19f   : > { %v493_v57 = vpack.c.bf16 %v490_v56, %v489_v55 }
 0x1a1   : > { %903 = vmatpush3.bf16.msra.mxu1 %v493_v57 }
 0x1a2   : > { %908 = vmatprep.subr.bf16.mxu1 %v1031_v59 }
 0x1a4   : > { %905 = vmatmul.mubr.msk.bf16.vlgmr.msra.gmra.mrb[0].mxu1 %vm506_vm4, %v1377_v58 }
 0x1a5   : > { %909 = vmatpush3.bf16.msra.mxu1 %v1031_v59 }
 0x1a6   : > { %910 = vmatprep.subr.bf16.mxu1 %v1032_v60 }
 0x1a9   : > { %911 = vmatpush3.bf16.msra.mxu1 %v1032_v60 }
 0x277   : > { %v544_v62 = vpop.f32.mrb[0].mxu1 }
 0x278   : > { %v545_v63 = vadd.f32 %v855_v61, %v544_v62  ;;  %v906_v0 = vpop.f32.mrb[1].mxu1 }
 0x279   : > { %v547_v1 = vpop.f32.mrb[2].mxu1 }
 0x27a   : > { %v548_v2 = vadd.f32 %v855_v61, %v547_v1  ;;  %v907_v3 = vpop.f32.mrb[3].mxu1  ;;  %v551_v4 = vmax.f32 %v545_v63, 0.0 }
 0x27c   : > { %v552_v5 = vmax.f32 %v548_v2, 0.0 }
 0x27e   : > { %v1003_v6 = vpack.i.bf16 %v552_v5, %v551_v4  ;;  %v573_v7 = vpack.c.bf16 %v552_v5, %v551_v4 }
 0x280   : > { %1004 = vrot.lane.b32.xlu0 %v1003_v6, %s1138_s14  ;;  %999 = vrot.lane.b32.xlu1 %v1003_v6, %s1137_s11  ;;  %s270_s14 = scalar_lea.vmem [#allocation5], %s848_s20 }
 0x281   : > { %912 = vmatprep.mubr.msk.bf16.mxu1 %vm305_vm0, %v573_v7  ;;  %s766_s15 = sshll.u32 %s270_s14, 4  ;;  %s1409_s15 = int_to_ptr.vmem [resolvable:$true] %s766_s15 }
 0x282   : > { %s1063_s12 = scalar_lea.vmem %s1409_s15, 256  ;;  %p1070_p8 = scmp.lt.s32.totalorder %s1409_s15, %s1068_s16 }
 0x283   : > { %p1064_p6 = scmp.ne.s32.totalorder %s1409_s15, %s1063_s12 }
 0x284   : > { %1009 = vrot.lane.b32.xlu1 %v1003_v6, %s1135_s8 }
 0x285   : > { %p1065_p12 = pnand %p1064_p6, %p1473_p11 }
 0x287   : > { %p1066_p13 = pneg %p1065_p12 }
 0x2f2   : > { %v1005_v8 = vpop.permute.xlu0 %1004  ;;  %v1000_v9 = vpop.permute.xlu1 %999 }
 0x2f3   : > { %v1007_v10 = vunpack.i.h.bf16 %v1005_v8  ;;  %v1006_v11 = vunpack.i.l.bf16 %v1005_v8  ;;  %v1002_v12 = vunpack.i.h.bf16 %v1000_v9  ;;  %v1001_v13 = vunpack.i.l.bf16 %v1000_v9 }
 0x2f5   : > { %v575_v14 = vpack.c.bf16 %v1007_v10, %v1006_v11  ;;  %v574_v15 = vpack.c.bf16 %v1002_v12, %v1001_v13 }
 0x2f6   : > { %v1010_v16 = vpop.permute.xlu1 %1009 }
 0x2f7   : > { %913 = vmatmul.mubr.msk.bf16.vlgmr.msra.gmra.mrb[4].mxu1 %vm305_vm0, %v574_v15  ;;  %v1012_v17 = vunpack.i.h.bf16 %v1010_v16  ;;  %v1011_v18 = vunpack.i.l.bf16 %v1010_v16 }
 0x2f8   : > { %916 = vmatprep.mubr.msk.bf16.mxu1 %vm305_vm0, %v575_v14 }
 0x2f9   : > { %v576_v19 = vpack.c.bf16 %v1012_v17, %v1011_v18 }
 0x2ff   : > { %917 = vmatmul.mubr.msk.bf16.gmra.mrb[8].mxu1 %vm305_vm0, %v576_v19 }
 0x3ca   : > { %v914_v20 = vpop.f32.mrb[4].mxu1 }
 0x3cb   : > { %v639_v21 = vpop.f32.mrb[5].mxu1 }
 0x3cc   : > { %v915_v22 = vpop.f32.mrb[6].mxu1 }
 0x3cd   : > { %v1013_v23 = vpack.i.bf16 %v915_v22, %v914_v20  ;;  %v642_v24 = vpop.f32.mrb[7].mxu1 }
 0x3cf   : > { %1014 = vrot.lane.b32.xlu0 %v1013_v23, %s1139_s18  ;;  %s1069_s18 = scalar_lea.vmem %s1068_s16, 512 }
 0x3d0   : > { %p1071_p10 = scmp.lt.s32.totalorder %s1069_s18, %s1063_s12 }
 0x3d2   : > { %v918_v25 = vpop.f32.mrb[8].mxu1  ;;  %p1072_p0 = por %p1071_p10, %p1070_p8 }
 0x3d3   : > { %v655_v26 = vpop.f32.mrb[9].mxu1 }
 0x3d4   : > { %v919_v27 = vpop.f32.mrb[10].mxu1  ;;  %p1073_p2 = pnand %p1072_p0, %p1066_p13 }
 0x3d5   : > { %v1023_v28 = vpack.i.bf16 %v919_v27, %v918_v25  ;;  %v658_v29 = vpop.f32.mrb[11].mxu1 }
 0x3d6   : > { %v1018_v30 = vpack.i.bf16 %v658_v29, %v655_v26 }
 0x3d7   : > { %1024 = vrot.lane.b32.xlu0 %v1023_v28, %s1140_s19 }
 0x3d8   : > { %1019 = vrot.lane.b32.xlu1 %v1018_v30, %s1135_s8 }
 0x441   : > { %v1015_v31 = vpop.permute.xlu0 %1014 }
 0x442   : > { %v1017_v32 = vunpack.i.h.bf16 %v1015_v31  ;;  %v1016_v33 = vunpack.i.l.bf16 %v1015_v31 }
 0x444   : > { %v694_v38 = vsel %vm506_vm4, %v639_v21, %v1016_v33  ;;  %v695_v39 = vsel %vm506_vm4, %v642_v24, %v1017_v32 }
 0x449   : > { %v1025_v34 = vpop.permute.xlu0 %1024 }
 0x44a   : > { %v1020_v35 = vpop.permute.xlu1 %1019  ;;  %v1027_v40 = vunpack.i.h.bf16 %v1025_v34  ;;  %v1026_v41 = vunpack.i.l.bf16 %v1025_v34 }
 0x44b   : > { %v1022_v36 = vunpack.i.h.bf16 %v1020_v35  ;;  %v1021_v37 = vunpack.i.l.bf16 %v1020_v35 }
 0x44d   : > { %v697_v42 = vsel %vm305_vm0, %v695_v39, %v1022_v36  ;;  %v696_v43 = vsel %vm305_vm0, %v694_v38, %v1021_v37 }
 0x44e   : > { %v700_v44 = vsel %vm698_vm5, %v697_v42, %v1027_v40  ;;  %v699_v45 = vsel %vm698_vm5, %v696_v43, %v1026_v41 }
 0x44f   : > { %v701_v46 = vpack.c.bf16 %v700_v44, %v699_v45 }
 0x451   : > { %921 = vmatpush3.bf16.msra.mxu0 %v701_v46 }
 0x454   : > { %923 = vmatmul.mubr.msk.bf16.vlgmr.msra.gmra.mrb[8].mxu0 %vm506_vm4, %v1377_v58 }
 0x527   : > { %v743_v48 = vpop.f32.mrb[8].mxu0 }
 0x528   : > { %v744_v49 = vadd.f32 %v864_v47, %v743_v48  ;;  %v924_v50 = vpop.f32.mrb[9].mxu0 }
 0x529   : > { %v746_v51 = vpop.f32.mrb[10].mxu0 }
 0x52a   : > { %750 = vst.msk [vmem:[%s270_s14] sm:$0xff] %vm485_vm2, %v744_v49  ;;  %v747_v52 = vadd.f32 %v864_v47, %v746_v51  ;;  %v925_v53 = vpop.f32.mrb[11].mxu0 }
 0x52c   : > { %751 = vst.msk [vmem:[%s270_s14 + $0x8] sm:$0xff] %vm485_vm2, %v747_v52 }
 0x52d   : > { %1076 = shalt.err (!%p1073_p2)
}
 0x52e   : > { %s1077_s19 = scalar_lea.hbm %s1414_s7, 256  ;;  %s1081_s11 = scalar_lea.hbm %s1466_s6, 512 }
 0x52f   : > { %p1078_p4 = scmp.ne.s32.totalorder %s1414_s7, %s1077_s19  ;;  %p1082_p9 = scmp.lt.u32.totalorder %s1414_s7, %s1466_s6 }
 0x530   : > { %p1083_p1 = scmp.lt.u32.totalorder %s1081_s11, %s1077_s19  ;;  %p1085_p6 = scmp.lt.u32.totalorder %s1077_s19, %s1414_s7 }
 0x531   : > { %p1079_p5 = pnand %p1078_p4, %p1473_p11 }
 0x532   : > { %p1084_p3 = por %p1083_p1, %p1082_p9 }
 0x533   : > { %p1080_p7 = pneg %p1079_p5 }
 0x534   : > { %p1086_p12 = por %p1085_p6, %p1084_p3 }
 0x536   : > { %p1087_p13 = pnand %p1086_p12, %p1080_p7 }
 0x538   : > { %1090 = shalt.err (!%p1087_p13)
}
 0x539   : > { %s1142_s26 = smov 128   ;;  %s1143_s28 = smov 8  }
 0x53a   : > { %928 = dma.vmem_to_hbm [thread:$0]  (%p1473_p11), %s1409_s15, 256, %s1414_s7, %s753_s25, %s1142_s26, %s1142_s26, %s1143_s28  }
 0x53b PF: > { %s781_s12 = sand.u32 1, %s1117_s21   ;;  %p1474_p8 = scmp.ne.s32.totalorder %s1471_s10, 0 }
 0x53c   : > { %p1475_p10 = scmp.ge.s32.totalorder %s1129_s24, 2  ;;  %s782_s13 = scalar_lea.sflag [#allocation4], %s781_s12 }
 0x53e   : > { %p935_p0 = pnand %p1475_p10, %p1474_p8 }
 0x540   : > { %1112 = dma.done.wait (!%p935_p0), %s782_s13, 256  }
 0x541   : > { %1114 = vsyncadd (!%p935_p0), %s782_s13, 4294967040  ;;  %p19_p2 = scmp.ge.s32.totalorder %s1204_s27, 4   ;;  %s1476_s21 = smov %s1121_s22 }
 0x542   : > { %s1477_s22 = smov %s1125_s23  ;;  %s1478_s23 = smov %s1216_s30 }
 0x543   : > { %s1479_s24 = smov %s1204_s27  ;;  %21 = sbr.rel (!%p19_p2) target bundleno = 5 (0x5), region = 89 }
 0x54a   :  { %787 = vsyncpa [#allocation3], 1 }
 0x54b   :  { %789 = vsyncpa [#allocation3 + $0x1], 1 }
 0x54c   :  { %790 = vsyncpa [#allocation4], 1 }
 0x54d   :  { %792 = vsyncpa [#allocation4 + $0x1], 1 }

</bundles_post_ra>
